<compile_context>
chip_gen: v7x
topology: tpu7x:2x2x1
jax: 0.10.0
libtpu: 0.0.40
codegen_flags: <defaults>
</compile_context>

<pallas_src>
import functools

import jax
import jax.numpy as jnp
from jax.experimental import pallas as pl
from jax.experimental.pallas import tpu as pltpu

_SUBLANES = 8
_LANES = 128


def _round_up(x, m):
    return (x + m - 1) // m * m


def _vmem_capacity_bytes():
    try:
        return int(pltpu.get_tpu_info().vmem_capacity_bytes)
    except Exception:
        return 64 * 1024 * 1024  # v7x per-TC floor; conservative everywhere.


def _kldiv_kernel(e1_ref, e2_ref, out_ref, *, inv_temp, n_rows, tile_rows):
    i = pl.program_id(0)

    # ---- emb2 (log_q) softmax statistics first so its exp temp dies before
    #      exp1 is materialized (fewer simultaneously-live (TM, D) buffers).
    z2 = e2_ref[...].astype(jnp.float32) * inv_temp
    m2 = jnp.max(z2, axis=-1, keepdims=True)                    # (TM, 1)
    denom2 = jnp.sum(jnp.exp(z2 - m2), axis=-1, keepdims=True)  # (TM, 1)

    # ---- emb1 (p) statistics + the weighted cross term.
    z1 = e1_ref[...].astype(jnp.float32) * inv_temp
    m1 = jnp.max(z1, axis=-1, keepdims=True)                    # (TM, 1)
    # s1 - s2 = (z1 - m1) - (z2 - m2) = (z1 - z2) - (m1 - m2): single diff
    # buffer; z2 is dead after this line.
    diff = (z1 - z2) - (m1 - m2)                                # (TM, D)
    exp1 = jnp.exp(z1 - m1)                                     # (TM, D); z1 dies
    denom1 = jnp.sum(exp1, axis=-1, keepdims=True)              # (TM, 1)
    wsum = jnp.sum(exp1 * diff, axis=-1, keepdims=True)         # (TM, 1)

    # sum_j p_j (log p_j - log q_j)
    #   = wsum / denom1 + log(denom2) - log(denom1)
    #   = wsum * recip1 + log(denom2 * recip1)     (one log instead of two)
    recip1 = pl.reciprocal(denom1)   # exact (approx would exceed 1e-5 tol)
    row_kl = wsum * recip1 + jnp.log(denom2 * recip1)           # (TM, 1)

    # Mask rows of the (possibly ragged) last tile that fall past N.  Padded
    # rows may hold garbage (even NaN/inf) but are zeroed here, BEFORE any
    # cross-row reduction.
    row_ids = i * tile_rows + jax.lax.broadcasted_iota(
        jnp.int32, (tile_rows, 1), 0)
    row_kl = jnp.where(row_ids < n_rows, row_kl, 0.0)

    # One partial sum per grid step, splatted into a full (8, 128) block so
    # the output store is an unmasked, layout-aligned vst and the grid axis
    # stays "parallel" (both TensorCores on v7x).
    out_ref[...] = jnp.broadcast_to(jnp.sum(row_kl), (_SUBLANES, _LANES))


def kldiv_loss(emb1, emb2, temperature=0.2, max_tile_rows=None):
    """Pallas TPU implementation of KLDivLoss.forward. emb1/emb2: (N, D)."""
    assert emb1.shape == emb2.shape and emb1.ndim == 2
    N, D = emb1.shape
    inv_temp = 1.0 / float(temperature)

    # Row alignment: 8 rows/vreg for 32-bit, 16 for bf16/fp16 (sublane pack).
    itemsize = min(emb1.dtype.itemsize, emb2.dtype.itemsize)
    row_align = max(_SUBLANES, (_SUBLANES * 4) // max(1, itemsize))

    # VMEM budgeting (f32-equivalent per-input tile).  Working set is roughly
    # 2 inputs x 2 pipeline buffers + ~3 live f32 temporaries ~= 7 tiles.
    vmem_cap = _vmem_capacity_bytes()
    vmem_limit = min(vmem_cap * 3 // 4, 96 * 1024 * 1024)   # 48 MiB on v7x,
    tile_budget = min(8 * 1024 * 1024, vmem_limit // 10)    # 96 MiB v5e/v6e.

    # Guard until class-axis streaming exists (see TODO at top of file).
    min_tile_f32 = row_align * D * 4
    if 7 * min_tile_f32 > vmem_limit:
        # TODO(synk): class-axis online-softmax streaming for vocab-sized D.
        raise NotImplementedError(
            "D too large for a single class-axis tile; streaming reduction "
            "over D is not implemented yet.")

    rows_for_budget = max(
        row_align, (tile_budget // (D * 4)) // row_align * row_align)
    tm = min(_round_up(N, row_align), rows_for_budget)
    if max_tile_rows is not None:
        tm = min(tm, _round_up(max_tile_rows, row_align))
    num_tiles = pl.cdiv(N, tm)

    # Guarantee >= 2 grid steps when possible so the parallel axis actually
    # shards across both TensorCores on v7x (harmless on v5e/v6e).
    if num_tiles == 1 and N >= 2 * row_align:
        tm = _round_up(pl.cdiv(N, 2), row_align)
        num_tiles = pl.cdiv(N, tm)

    kernel = functools.partial(
        _kldiv_kernel, inv_temp=inv_temp, n_rows=N, tile_rows=tm)

    partial_blocks = pl.pallas_call(
        kernel,
        out_shape=jax.ShapeDtypeStruct((num_tiles * _SUBLANES, _LANES),
                                       jnp.float32),
        grid=(num_tiles,),
        in_specs=[
            pl.BlockSpec((tm, D), lambda i: (i, 0)),
            pl.BlockSpec((tm, D), lambda i: (i, 0)),
        ],
        out_specs=pl.BlockSpec((_SUBLANES, _LANES), lambda i: (i, 0)),
        compiler_params=pltpu.CompilerParams(
            dimension_semantics=("parallel",),
            vmem_limit_bytes=vmem_limit,
        ),
    )(emb1, emb2)

    # Every element of a partial block holds the same value; a contiguous sum
    # over lane 0 of the slab avoids the previous strided [::8, 0] gather.
    total = jnp.sum(partial_blocks[:, 0])
    # PyTorch: sum over dim=1 (in-kernel), then mean over rows; each partial
    # is replicated over _SUBLANES rows of its block.
    return total / (_SUBLANES * N)


if __name__ == "__main__":
    key = jax.random.PRNGKey(0)
    k1, k2 = jax.random.split(key)
    T = 0.2

    def ref_loss(e1, e2, t):
        e1 = e1.astype(jnp.float32)
        e2 = e2.astype(jnp.float32)
        p = jax.nn.softmax(e1 / t, axis=1)
        log_q = jax.nn.log_softmax(e2 / t, axis=1)
        return jnp.mean(jnp.sum(p * (jnp.log(p) - log_q), axis=1))

    # Case 1: small shape consistent with the module (batch=8, 32 classes).
    N, D = 8, 32
    emb1 = jax.random.normal(k1, (N, D), dtype=jnp.float32)
    emb2 = jax.random.normal(k2, (N, D), dtype=jnp.float32)
    loss = kldiv_loss(emb1, emb2, temperature=T)
    jax.block_until_ready(loss)
    assert jnp.allclose(loss, ref_loss(emb1, emb2, T), rtol=1e-5, atol=1e-5), (
        loss, ref_loss(emb1, emb2, T))

    # Case 2: multi-tile grid with a ragged last tile (exercises the row mask
    # and the pipelined / parallel-partials path).
    N2, D2 = 20, 32
    e1 = jax.random.normal(k1, (N2, D2), dtype=jnp.float32)
    e2 = jax.random.normal(k2, (N2, D2), dtype=jnp.float32)
    loss2 = kldiv_loss(e1, e2, temperature=T, max_tile_rows=8)
    jax.block_until_ready(loss2)
    assert jnp.allclose(loss2, ref_loss(e1, e2, T), rtol=1e-5, atol=1e-5), (
        loss2, ref_loss(e1, e2, T))

    # Case 3: bf16 inputs straight into the kernel (half the HBM bytes); all
    # math is still done in f32 inside the kernel.
    N3, D3 = 16, 32
    b1 = jax.random.normal(k1, (N3, D3), dtype=jnp.float32).astype(jnp.bfloat16)
    b2 = jax.random.normal(k2, (N3, D3), dtype=jnp.float32).astype(jnp.bfloat16)
    loss3 = kldiv_loss(b1, b2, temperature=T)
    jax.block_until_ready(loss3)
    assert jnp.allclose(loss3, ref_loss(b1, b2, T), rtol=1e-4, atol=1e-5), (
        loss3, ref_loss(b1, b2, T))

    print("KERNEL_OK")
</pallas_src>

<mosaic_0001>
module attributes {stable_mosaic.version = 11 : i64} {
  func.func @_kldiv_kernel(%arg0: i32, %arg1: memref<8x32xf32, #tpu.memory_space<vmem>>, %arg2: memref<8x32xf32, #tpu.memory_space<vmem>>, %arg3: memref<8x128xf32, #tpu.memory_space<vmem>>) attributes {dimension_semantics = [#tpu.dimension_semantics<parallel>], iteration_bounds = array<i64: 1>, scalar_prefetch = 0 : i64, scratch_operands = 0 : i64, tpu.core_type = #tpu.core_type<tc>, window_params = [{transform_indices = @transform_0, window_bounds = array<i64: 8, 32>}, {transform_indices = @transform_1, window_bounds = array<i64: 8, 32>}, {transform_indices = @transform_2, window_bounds = array<i64: 8, 128>}]} {
    %c0 = arith.constant 0 : index
    %c0_0 = arith.constant 0 : index
    %0 = vector.load %arg2[%c0, %c0_0] : memref<8x32xf32, #tpu.memory_space<vmem>>, vector<8x32xf32>
    %cst = arith.constant 5.000000e+00 : f32
    %1 = vector.broadcast %cst : f32 to vector<8x32xf32>
    %2 = arith.mulf %0, %1 : vector<8x32xf32>
    %cst_1 = arith.constant dense<0xFF800000> : vector<8xf32>
    %3 = vector.multi_reduction <maximumf>, %2, %cst_1 [1] : vector<8x32xf32> to vector<8xf32>
    %4 = vector.shape_cast %3 : vector<8xf32> to vector<8x1xf32>
    %5 = vector.broadcast %4 : vector<8x1xf32> to vector<8x32xf32>
    %6 = arith.subf %2, %5 : vector<8x32xf32>
    %7 = math.exp %6 : vector<8x32xf32>
    %cst_2 = arith.constant dense<0.000000e+00> : vector<8xf32>
    %8 = vector.multi_reduction <add>, %7, %cst_2 [1] : vector<8x32xf32> to vector<8xf32>
    %9 = vector.shape_cast %8 : vector<8xf32> to vector<8x1xf32>
    %c0_3 = arith.constant 0 : index
    %c0_4 = arith.constant 0 : index
    %10 = vector.load %arg1[%c0_3, %c0_4] : memref<8x32xf32, #tpu.memory_space<vmem>>, vector<8x32xf32>
    %cst_5 = arith.constant 5.000000e+00 : f32
    %11 = vector.broadcast %cst_5 : f32 to vector<8x32xf32>
    %12 = arith.mulf %10, %11 : vector<8x32xf32>
    %cst_6 = arith.constant dense<0xFF800000> : vector<8xf32>
    %13 = vector.multi_reduction <maximumf>, %12, %cst_6 [1] : vector<8x32xf32> to vector<8xf32>
    %14 = vector.shape_cast %13 : vector<8xf32> to vector<8x1xf32>
    %15 = arith.subf %12, %2 : vector<8x32xf32>
    %16 = arith.subf %14, %4 : vector<8x1xf32>
    %17 = vector.broadcast %16 : vector<8x1xf32> to vector<8x32xf32>
    %18 = arith.subf %15, %17 : vector<8x32xf32>
    %19 = vector.broadcast %14 : vector<8x1xf32> to vector<8x32xf32>
    %20 = arith.subf %12, %19 : vector<8x32xf32>
    %21 = math.exp %20 : vector<8x32xf32>
    %cst_7 = arith.constant dense<0.000000e+00> : vector<8xf32>
    %22 = vector.multi_reduction <add>, %21, %cst_7 [1] : vector<8x32xf32> to vector<8xf32>
    %23 = vector.shape_cast %22 : vector<8xf32> to vector<8x1xf32>
    %24 = arith.mulf %21, %18 : vector<8x32xf32>
    %cst_8 = arith.constant dense<0.000000e+00> : vector<8xf32>
    %25 = vector.multi_reduction <add>, %24, %cst_8 [1] : vector<8x32xf32> to vector<8xf32>
    %26 = vector.shape_cast %25 : vector<8xf32> to vector<8x1xf32>
    %27 = tpu.reciprocal %23 : vector<8x1xf32> -> vector<8x1xf32>
    %28 = arith.mulf %26, %27 : vector<8x1xf32>
    %29 = arith.mulf %9, %27 : vector<8x1xf32>
    %30 = math.log %29 : vector<8x1xf32>
    %31 = arith.addf %28, %30 : vector<8x1xf32>
    %c8_i32 = arith.constant 8 : i32
    %32 = arith.muli %arg0, %c8_i32 : i32
    %33 = tpu.iota {dimensions = array<i32: 0>} : vector<8x1xi32>
    %34 = vector.broadcast %32 : i32 to vector<8x1xi32>
    %35 = arith.addi %34, %33 : vector<8x1xi32>
    %c8_i32_9 = arith.constant 8 : i32
    %36 = vector.broadcast %c8_i32_9 : i32 to vector<8x1xi32>
    %37 = arith.cmpi slt, %35, %36 : vector<8x1xi32>
    %cst_10 = arith.constant 0.000000e+00 : f32
    %38 = vector.broadcast %cst_10 : f32 to vector<8x1xf32>
    %39 = arith.select %37, %31, %38 : vector<8x1xi1>, vector<8x1xf32>
    %40 = vector.shape_cast %39 : vector<8x1xf32> to vector<1x8x1xf32>
    %cst_11 = arith.constant dense<0.000000e+00> : vector<1xf32>
    %41 = vector.multi_reduction <add>, %40, %cst_11 [1, 2] : vector<1x8x1xf32> to vector<1xf32>
    %42 = vector.shape_cast %41 : vector<1xf32> to vector<1x1x1xf32>
    %43 = vector.extract %42[0, 0, 0] : f32 from vector<1x1x1xf32>
    %44 = vector.broadcast %43 : f32 to vector<8x128xf32>
    %c0_12 = arith.constant 0 : index
    %c0_13 = arith.constant 0 : index
    %45 = vector.load %arg3[%c0_12, %c0_13] : memref<8x128xf32, #tpu.memory_space<vmem>>, vector<8x128xf32>
    tpu.vector_store %arg3[%c0_12, %c0_13], %44 {strides = array<i32>} : memref<8x128xf32, #tpu.memory_space<vmem>>, vector<8x128xf32>,
    return
  }
  func.func @transform_0(%arg0: i32) -> (i32, i32) {
    %c0_i32 = arith.constant 0 : i32
    %c0_i32_0 = arith.constant 0 : i32
    return %arg0, %c0_i32 : i32, i32
  }
  func.func @transform_1(%arg0: i32) -> (i32, i32) {
    %c0_i32 = arith.constant 0 : i32
    %c0_i32_0 = arith.constant 0 : i32
    return %arg0, %c0_i32 : i32, i32
  }
  func.func @transform_2(%arg0: i32) -> (i32, i32) {
    %c0_i32 = arith.constant 0 : i32
    %c0_i32_0 = arith.constant 0 : i32
    return %arg0, %c0_i32 : i32, i32
  }
}

</mosaic_0001>

<bundles_post_ra>
// kernel: tpu_custom_call.1
= control target key start
LH: loop header
LB: loop body
LE: loop exit
PB: predicated region body
PF: predicated region fallthrough
CT: control target
= control target key end

     0   :  { %7 = vsyncpa [#allocation3], 0  ;;  %s252_s0 = inlined_call_operand.hbm [shape: f32[8,32], index: 0, kind: input, shape index: {}]   ;;  %s253_s1 = inlined_call_operand.hbm [shape: f32[8,32], index: 1, kind: input, shape index: {}]   ;;  %s254_s2 = inlined_call_operand.hbm [shape: f32[8,128], index: 2, kind: output, shape index: {}]  }
   0x1   :  { %8 = vsyncpa [#allocation6], 0 }
   0x2   :  { %9 = vsyncpa [#allocation4], 0  ;;  %s193_s9 = smov [#allocation2]   ;;  %s194_s11 = smov [#allocation5]  }
   0x3   :  { %s16_s10 = sshll.u32 %s193_s9, 4  ;;  %s26_s12 = sshll.u32 %s194_s11, 4  ;;  %s17_s10 = int_to_ptr.vmem [resolvable:$true] %s16_s10  ;;  %s27_s12 = int_to_ptr.vmem [resolvable:$true] %s26_s12 }
   0x4   :  { %s121_s15 = scalar_lea.hbm %s252_s0, 128 }
   0x5   :  { %p122_p0 = scmp.ne.s32.totalorder %s252_s0, %s121_s15  ;;  %p125_p1 = scmp.lt.u32.totalorder %s121_s15, %s252_s0 }
   0x7   :  { %p127_p2 = pnand %p125_p1, %p122_p0 }
   0x9   :  { %130 = shalt.err (!%p127_p2)
}
   0xa   :  { %s131_s20 = scalar_lea.vmem %s17_s10, 128  ;;  %p136_p4 = scmp.lt.s32.totalorder %s17_s10, %s17_s10 }
   0xb   :  { %p132_p3 = scmp.ne.s32.totalorder %s17_s10, %s131_s20  ;;  %p137_p5 = scmp.lt.s32.totalorder %s131_s20, %s131_s20 }
   0xd   :  { %p138_p6 = por %p137_p5, %p136_p4 }
   0xf   :  { %p139_p7 = pnand %p138_p6, %p132_p3 }
  0x11   :  { %142 = shalt.err (!%p139_p7)
}
  0x12   :  { %19 = dma.hbm_to_vmem [thread:$0]  %s252_s0, 128, %s17_s10, [#allocation3]  }
  0x13   :  { %s143_s25 = scalar_lea.hbm %s253_s1, 128 }
  0x14   :  { %p144_p8 = scmp.ne.s32.totalorder %s253_s1, %s143_s25  ;;  %p147_p9 = scmp.lt.u32.totalorder %s143_s25, %s253_s1 }
  0x16   :  { %p149_p10 = pnand %p147_p9, %p144_p8 }
  0x18   :  { %152 = shalt.err (!%p149_p10)
}
  0x19   :  { %s153_s30 = scalar_lea.vmem %s27_s12, 128  ;;  %p158_p12 = scmp.lt.s32.totalorder %s27_s12, %s27_s12 }
  0x1a   :  { %p154_p11 = scmp.ne.s32.totalorder %s27_s12, %s153_s30  ;;  %p159_p13 = scmp.lt.s32.totalorder %s153_s30, %s153_s30 }
  0x1c   :  { %p160_p0 = por %p159_p13, %p158_p12 }
  0x1e   :  { %p161_p1 = pnand %p160_p0, %p154_p11 }
  0x20   :  { %164 = shalt.err (!%p161_p1)
}
  0x21   :  { %29 = dma.hbm_to_vmem [thread:$0]  %s253_s1, 128, %s27_s12, [#allocation6]  }
  0x22   :  { %187 = dma.done.wait [#allocation3], 128  }
  0x23   :  { %188 = vsyncadd [#allocation3], 4294967168 }
  0x24   :  { %189 = dma.done.wait [#allocation6], 128  }
  0x25   :  { %190 = vsyncadd [#allocation6], 4294967168  ;;  %vm38_vm0 = vcmask 261120   ;;  %v48_v0 = vld [vmem:[#allocation2] sm:$0xff]  ;;  %v36_v1 = vld [vmem:[#allocation5] sm:$0xff]  ;;  %vm79_vm1 = vcmask 7168  }
  0x26   :  { %v49_v2 = vmul.f32 5.0, %v48_v0  ;;  %v37_v3 = vmul.f32 5.0, %v36_v1  ;;  %s195_s1 = smov [#allocation7]  }
  0x27   :  { %s98_s4 = sshll.u32 %s195_s1, 4  ;;  %s99_s4 = int_to_ptr.vmem [resolvable:$true] %s98_s4 }
  0x28   :  { %v50_v4 = vsel %vm38_vm0, %v49_v2, -inf  ;;  %v39_v5 = vsel %vm38_vm0, %v37_v3, -inf  ;;  %v53_v12 = vsub.f32 %v49_v2, %v37_v3  ;;  %s165_s6 = scalar_lea.vmem %s99_s4, 128  ;;  %p170_p3 = scmp.lt.s32.totalorder %s99_s4, %s99_s4 }
  0x29   :  { %51 = vmax.xlane.f32.xlu0 %v50_v4  ;;  %p166_p2 = scmp.ne.s32.totalorder %s99_s4, %s165_s6  ;;  %p171_p4 = scmp.lt.s32.totalorder %s165_s6, %s165_s6 }
  0x2b   :  { %p172_p5 = por %p171_p4, %p170_p3 }
  0x2d   :  { %40 = vmax.xlane.f32.xlu0 %v39_v5  ;;  %p173_p6 = pnand %p172_p5, %p166_p2 }
  0xb6   :  { %v52_v6 = vpop.xlane.xlu0 %51 }
  0xb7   :  { %v56_v7 = vsub.f32 %v49_v2, %v52_v6 }
  0xb9   :  { %v57_v8 = vmul.f32 1.442695, %v56_v7 }
  0xba   :  { %v41_v9 = vpop.xlane.xlu0 %40 }
  0xbb   :  { %113 = vpow2.f32 %v57_v8  ;;  %v42_v10 = vsub.f32 %v37_v3, %v41_v9  ;;  %v54_v13 = vsub.f32 %v52_v6, %v41_v9 }
  0xbd   :  { %v43_v11 = vmul.f32 1.442695, %v42_v10  ;;  %v55_v14 = vsub.f32 %v53_v12, %v54_v13 }
  0xbf   :  { %115 = vpow2.f32 %v43_v11 }
  0xc5   :  { %v114_v15 = vpop.eup %113 }
  0xc6   :  { %v59_v16 = vsel %vm38_vm0, %v114_v15, 0.0  ;;  %v62_v17 = vmul.f32 %v114_v15, %v55_v14 }
  0xc7   :  { %60 = vadd.xlane.f32.xlu1 %v59_v16 }
  0xc8   :  { %v63_v18 = vsel %vm38_vm0, %v62_v17, 0.0 }
  0xc9   :  { %v116_v19 = vpop.eup %115  ;;  %64 = vadd.xlane.f32.xlu0 %v63_v18 }
  0xca   :  { %v45_v20 = vsel %vm38_vm0, %v116_v19, 0.0 }
  0xcb   :  { %46 = vadd.xlane.f32.xlu1 %v45_v20 }
 0x154   :  { %v61_v21 = vpop.xlane.xlu1 %60 }
 0x155   :  { %117 = vrcp.f32 %v61_v21 }
 0x156   :  { %v65_v26 = vpop.xlane.xlu0 %64 }
 0x158   :  { %v47_v22 = vpop.xlane.xlu1 %46 }
 0x15f   :  { %v118_v23 = vpop.eup %117 }
 0x160   :  { %v68_v24 = vmul.f32 %v118_v23, %v47_v22  ;;  %v67_v27 = vmul.f32 %v118_v23, %v65_v26 }
 0x162   :  { %119 = vlog2.f32 %v68_v24 }
 0x16c   :  { %v120_v25 = vpop.eup %119 }
 0x16d   :  { %v70_v28 = vmul.f32 0.6931472, %v120_v25 }
 0x16f   :  { %v71_v29 = vadd.f32 %v70_v28, %v67_v27 }
 0x171   :  { %v80_v30 = vsel %vm79_vm1, %v71_v29, 0.0 }
 0x172   :  { %81 = vadd.xlane.f32.xlu1 %v80_v30 }
 0x1ff   :  { %v82_v31 = vpop.xlane.xlu1 %81 }
 0x200   :  { %v83_v32 = vrot.slane %v82_v31, 4 }
 0x202   :  { %v84_v33 = vadd.f32 %v83_v32, %v82_v31 }
 0x204   :  { %v85_v34 = vrot.slane %v84_v33, 2 }
 0x206   :  { %v86_v35 = vadd.f32 %v85_v34, %v84_v33 }
 0x208   :  { %v87_v36 = vrot.slane %v86_v35, 1 }
 0x20a   :  { %v88_v37 = vadd.f32 %v87_v36, %v86_v35 }
 0x20c   :  { %108 = vpush %v88_v37 }
 0x23d   :  { %s109_s5 = spop %108 }
 0x23e   :  { %v90_v38 = vstv %s109_s5 }
 0x23f   :  { %91 = vst [vmem:[#allocation7] sm:$0xff] %v90_v38 }
 0x240   :  { %176 = shalt.err (!%p173_p6)
}
 0x241   :  { %s177_s9 = scalar_lea.hbm %s254_s2, 128 }
 0x242   :  { %p178_p7 = scmp.ne.s32.totalorder %s254_s2, %s177_s9  ;;  %p181_p8 = scmp.lt.u32.totalorder %s177_s9, %s254_s2 }
 0x244   :  { %p183_p9 = pnand %p181_p8, %p178_p7 }
 0x246   :  { %186 = shalt.err (!%p183_p9)
}
 0x247   :  { %101 = dma.vmem_to_hbm [thread:$0]  %s99_s4, 128, %s254_s2, [#allocation4]  }
 0x248   :  { %191 = dma.done.wait [#allocation4], 128  }
 0x249   :  { %192 = vsyncadd [#allocation4], 4294967168 }
 0x24a   :  { %105 = vsyncpa [#allocation3], 1 }
 0x24b   :  { %106 = vsyncpa [#allocation6], 1 }
 0x24c   :  { %107 = vsyncpa [#allocation4], 1 }

</bundles_post_ra>
